<compile_context>
chip_gen: v5e
topology: v5e:2x2
jax: 0.10.0
libtpu: 0.0.40
codegen_flags: <defaults>
</compile_context>

<pallas_src>
import math

import jax
import jax.numpy as jnp
from jax.experimental import pallas as pl
from jax.experimental.pallas import tpu as pltpu

BN_EPS = 1e-5
_INV_SQRT2 = 0.7071067811865476


def _stats_kernel(x_ref, g_ref, sx_ref):
    """Pass 1: accumulate per-batch input Gram matrix + per-channel sums.

    x_ref:  (Cin, TM)   subsampled activation tile (caller dtype), spatial on lanes
    g_ref:  (Cin, Cin)  f32 accumulator, resident across the spatial grid axis
    sx_ref: (Cin, 1)    f32 accumulator
    Zero-padded spatial columns contribute nothing to either accumulator.
    """
    @pl.when(pl.program_id(1) == 0)
    def _init():
        g_ref[...] = jnp.zeros_like(g_ref)
        sx_ref[...] = jnp.zeros_like(sx_ref)

    xt = x_ref[...]
    # Input Gram on the (otherwise idle) MXU, large-K matmul; no conv weight needed.
    g_ref[...] += jnp.dot(xt, xt.T, preferred_element_type=jnp.float32)
    # Cin-tall cross-lane reduce (cheap on the XLU).
    sx_ref[...] += jnp.sum(xt.astype(jnp.float32), axis=-1, keepdims=True)


def _apply_kernel(x_ref, w_ref, scale_ref, shift_ref, o_ref):
    """Pass 2: recompute the thin-Cin conv per tile, apply folded BN affine + exact GELU.

    x_ref:     (Cin, TM)    activation tile (caller dtype)
    w_ref:     (Cout, Cin)  1x1 conv weight (caller dtype)
    scale_ref: (Cout, 1)    f32  folded BN scale  (gamma * rstd)
    shift_ref: (Cout, 1)    f32  folded BN shift  (beta - mean * scale)
    o_ref:     (Cout, TM)   output tile (caller dtype), spatial on lanes
    """
    y = jnp.dot(w_ref[...], x_ref[...], preferred_element_type=jnp.float32)  # (Cout, TM)
    z = y * scale_ref[...] + shift_ref[...]
    # Exact GELU (nn.GELU default approximate='none'). A tanh/EUP variant would off-load
    # the VPU but changes module semantics; a bf16 polynomial is an option on v6e/v7x.
    o_ref[...] = (0.5 * z * (1.0 + jax.lax.erf(z * _INV_SQRT2))).astype(o_ref.dtype)


def _pick_spatial_tile(s, max_tile=1024):
    """Pad S to a 128 multiple; pick the largest 128-multiple tile <= max_tile dividing it.

    Guarantees unmasked, lane-dense stores and a bounded per-step VMEM footprint
    (v7x-friendly), while keeping zero or small spatial padding.
    """
    s_pad = ((s + 127) // 128) * 128
    tm = 128
    t = 128
    while t <= min(s_pad, max_tile):
        if s_pad % t == 0:
            tm = t
        t += 128
    # If 128-padding only admits small tiles, allow a bit more padding for a 512 tile.
    if tm < 512 and s >= 512:
        s_pad512 = ((s + 511) // 512) * 512
        if s_pad512 - s <= s_pad512 // 8:
            return 512, s_pad512
    return tm, s_pad


def downsampling_forward(x_nchw, conv_w, conv_b, bn_gamma, bn_beta, *, mxu_dtype=None):
    """x_nchw: (N, Cin, H, W); conv_w: (Cout, Cin, 1, 1); returns (N, Cout, H_out, W_out)."""
    del conv_b  # Cancels exactly under training-mode BatchNorm (batch-mean subtraction).

    n, cin, h, w = x_nchw.shape
    cout = conv_w.shape[0]
    h_out = (h + 1) // 2
    w_out = (w + 1) // 2
    s = h_out * w_out
    out_dtype = x_nchw.dtype

    # MXU operand dtype: bf16 callers stay bf16 (half the HBM bytes, native MXU path);
    # f32 callers keep full f32 fidelity unless explicitly overridden.
    if mxu_dtype is not None:
        cdt = jnp.dtype(mxu_dtype)
    else:
        cdt = jnp.bfloat16 if x_nchw.dtype == jnp.bfloat16 else jnp.float32

    tm, s_pad = _pick_spatial_tile(s)
    grid = (n, s_pad // tm)
    count = float(n * s)            # true per-channel sample count (padding excluded)

    # Stride-2 of a 1x1 conv == pure spatial subsample; stay NCHW so the conv is a
    # channels x spatial matmul. Flattened spatial is zero-padded to the tile boundary.
    # TODO(synk): fold this subsample into the kernels' input DMA (see file header).
    x_sub = x_nchw[:, :, ::2, ::2].reshape(n, cin, s).astype(cdt)
    if s_pad != s:
        x_rows = jnp.zeros((n, cin, s_pad), cdt).at[:, :, :s].set(x_sub)
    else:
        x_rows = x_sub

    w_mat = conv_w.reshape(cout, cin).astype(cdt)
    x_spec = pl.BlockSpec((None, cin, tm), lambda b, t: (b, 0, t))

    # Right-size the VMEM request from the actual per-step footprint (review: blanket
    # 48 MiB leaves little headroom on v7x's 64 MiB physical VMEM).
    in_b = jnp.dtype(cdt).itemsize
    out_b = jnp.dtype(out_dtype).itemsize
    step_bytes = (2 * cin * tm * in_b            # x tile, double-buffered
                  + 2 * cout * tm * out_b        # out tile, double-buffered
                  + 4 * cout * tm * 4            # f32 y/z/GELU temporaries
                  + 2 * (cout * cin + 2 * cout) * 4
                  + 2 * cin * (cin + 1) * 4)     # pass-1 accumulators
    vmem_limit = int(min(48 * 2**20, max(8 * 2**20, 2 * step_bytes)))

    # ---- Pass 1: per-batch input Gram + channel sums (batch axis megacore-parallel).
    g_part, sx_part = pl.pallas_call(
        _stats_kernel,
        out_shape=(jax.ShapeDtypeStruct((n, cin, cin), jnp.float32),
                   jax.ShapeDtypeStruct((n, cin, 1), jnp.float32)),
        grid=grid,
        in_specs=[x_spec],
        out_specs=(pl.BlockSpec((None, cin, cin), lambda b, t: (b, 0, 0)),
                   pl.BlockSpec((None, cin, 1), lambda b, t: (b, 0, 0))),
        compiler_params=pltpu.CompilerParams(
            dimension_semantics=("parallel", "arbitrary"),
            vmem_limit_bytes=vmem_limit),
    )(x_rows)

    # ---- Tiny f32 reductions + BN fold in XLA (hoisted out of the kernels).
    g = jnp.sum(g_part, axis=0)                       # (Cin, Cin)
    sx = jnp.sum(sx_part, axis=0)[:, 0]               # (Cin,)
    w32 = conv_w.reshape(cout, cin).astype(jnp.float32)
    sum_y = w32 @ sx                                  # (Cout,)
    sumsq_y = jnp.sum((w32 @ g) * w32, axis=-1)       # diag(W G W^T), (Cout,)
    inv_n = 1.0 / count
    mean = sum_y * inv_n
    # E[y^2]-E[y]^2 is cancellation-prone for large DC offsets; clamp keeps it valid.
    var = jnp.maximum(sumsq_y * inv_n - mean * mean, 0.0)
    rstd = jax.lax.rsqrt(var + BN_EPS)
    gamma32 = bn_gamma.astype(jnp.float32)
    scale = (gamma32 * rstd).reshape(cout, 1)
    shift = (bn_beta.astype(jnp.float32) - mean * gamma32 * rstd).reshape(cout, 1)

    # ---- Pass 2: recompute the thin-Cin conv per tile (cheaper than an HBM round trip
    # of y), apply the folded BN affine + exact GELU, write lane-dense NCHW tiles.
    out_rows = pl.pallas_call(
        _apply_kernel,
        out_shape=jax.ShapeDtypeStruct((n, cout, s_pad), out_dtype),
        grid=grid,
        in_specs=[x_spec,
                  pl.BlockSpec((cout, cin), lambda b, t: (0, 0)),
                  pl.BlockSpec((cout, 1), lambda b, t: (0, 0)),
                  pl.BlockSpec((cout, 1), lambda b, t: (0, 0))],
        out_specs=pl.BlockSpec((None, cout, tm), lambda b, t: (b, 0, t)),
        compiler_params=pltpu.CompilerParams(
            dimension_semantics=("parallel", "parallel"),
            vmem_limit_bytes=vmem_limit),
    )(x_rows, w_mat, scale, shift)

    if s_pad != s:
        out_rows = out_rows[:, :, :s]
    return out_rows.reshape(n, cout, h_out, w_out)


def _reference_forward(x_nchw, conv_w, conv_b, bn_gamma, bn_beta):
    """Pure-JAX reference (same math, f32) for a correctness check."""
    n, cin, h, w = x_nchw.shape
    cout = conv_w.shape[0]
    x_sub = x_nchw[:, :, ::2, ::2].astype(jnp.float32)
    y = jnp.einsum('nchw,oc->nohw', x_sub, conv_w.reshape(cout, cin).astype(jnp.float32))
    y = y + conv_b.astype(jnp.float32)[None, :, None, None]
    mean = jnp.mean(y, axis=(0, 2, 3), keepdims=True)
    var = jnp.mean((y - mean) ** 2, axis=(0, 2, 3), keepdims=True)
    y_hat = (y - mean) * jax.lax.rsqrt(var + BN_EPS)
    z = y_hat * bn_gamma.astype(jnp.float32)[None, :, None, None] \
        + bn_beta.astype(jnp.float32)[None, :, None, None]
    return 0.5 * z * (1.0 + jax.lax.erf(z / jnp.sqrt(2.0)))


if __name__ == "__main__":
    key = jax.random.PRNGKey(0)
    k_x, k_w, k_b = jax.random.split(key, 3)

    N, IN_DIM, OUT_DIM, HW = 2, 4, 8, 16
    x = jax.random.normal(k_x, (N, IN_DIM, HW, HW), dtype=jnp.float32)

    # Deterministic parameter init (Conv2d kaiming-uniform-style bound, BN defaults).
    fan_in = IN_DIM * 1 * 1
    bound = 1.0 / math.sqrt(fan_in)
    conv_w = jax.random.uniform(k_w, (OUT_DIM, IN_DIM, 1, 1), jnp.float32, -bound, bound)
    conv_b = jax.random.uniform(k_b, (OUT_DIM,), jnp.float32, -bound, bound)
    bn_gamma = jnp.ones((OUT_DIM,), jnp.float32)
    bn_beta = jnp.zeros((OUT_DIM,), jnp.float32)

    # f32 path: full fidelity to the PyTorch module.
    out = jax.block_until_ready(downsampling_forward(x, conv_w, conv_b, bn_gamma, bn_beta))
    ref = _reference_forward(x, conv_w, conv_b, bn_gamma, bn_beta)
    assert out.shape == (N, OUT_DIM, HW // 2, HW // 2), out.shape
    assert out.dtype == x.dtype, out.dtype
    assert jnp.allclose(out, ref, atol=1e-4, rtol=1e-4), float(jnp.max(jnp.abs(out - ref)))

    # bf16 activation/weight path: half the HBM traffic, f32 accumulation + f32 BN/GELU.
    x_bf = x.astype(jnp.bfloat16)
    w_bf = conv_w.astype(jnp.bfloat16)
    out_bf = jax.block_until_ready(
        downsampling_forward(x_bf, w_bf, conv_b, bn_gamma, bn_beta))
    ref_bf = _reference_forward(x_bf, w_bf, conv_b, bn_gamma, bn_beta)
    assert out_bf.dtype == jnp.bfloat16
    assert jnp.allclose(out_bf.astype(jnp.float32), ref_bf, atol=3e-2, rtol=3e-2), \
        float(jnp.max(jnp.abs(out_bf.astype(jnp.float32) - ref_bf)))

    print("KERNEL_OK")
</pallas_src>

<mosaic_0001>
module attributes {stable_mosaic.version = 11 : i64} {
  func.func @_stats_kernel(%arg0: i32, %arg1: i32, %arg2: memref<1x4x128xf32, #tpu.memory_space<vmem>>, %arg3: memref<1x4x4xf32, #tpu.memory_space<vmem>>, %arg4: memref<1x4x1xf32, #tpu.memory_space<vmem>>) attributes {dimension_semantics = [#tpu.dimension_semantics<parallel>, #tpu.dimension_semantics<arbitrary>], iteration_bounds = array<i64: 2, 1>, scalar_prefetch = 0 : i64, scratch_operands = 0 : i64, tpu.core_type = #tpu.core_type<tc>, window_params = [{transform_indices = @transform_0, window_bounds = array<i64: 1, 4, 128>}, {transform_indices = @transform_1, window_bounds = array<i64: 1, 4, 4>}, {transform_indices = @transform_2, window_bounds = array<i64: 1, 4, 1>}]} {
    %c0_i32 = arith.constant 0 : i32
    %0 = arith.cmpi eq, %arg1, %c0_i32 : i32
    %1 = arith.extui %0 : i1 to i32
    %c0_i32_0 = arith.constant 0 : i32
    %2 = arith.cmpi ne, %1, %c0_i32_0 : i32
    scf.if %2 {
      %cst_16 = arith.constant 0.000000e+00 : f32
      %21 = vector.broadcast %cst_16 : f32 to vector<4x4xf32>
      %c0_17 = arith.constant 0 : index
      %c0_18 = arith.constant 0 : index
      %c0_19 = arith.constant 0 : index
      %22 = vector.load %arg3[%c0_17, %c0_18, %c0_19] : memref<1x4x4xf32, #tpu.memory_space<vmem>>, vector<1x4x4xf32>
      %23 = vector.shape_cast %22 : vector<1x4x4xf32> to vector<4x4xf32>
      %24 = vector.shape_cast %21 : vector<4x4xf32> to vector<1x4x4xf32>
      tpu.vector_store %arg3[%c0_17, %c0_18, %c0_19], %24 {strides = array<i32>} : memref<1x4x4xf32, #tpu.memory_space<vmem>>, vector<1x4x4xf32>,
      %cst_20 = arith.constant 0.000000e+00 : f32
      %25 = vector.broadcast %cst_20 : f32 to vector<4x1xf32>
      %c0_21 = arith.constant 0 : index
      %c0_22 = arith.constant 0 : index
      %c0_23 = arith.constant 0 : index
      %26 = vector.load %arg4[%c0_21, %c0_22, %c0_23] : memref<1x4x1xf32, #tpu.memory_space<vmem>>, vector<1x4x1xf32>
      %27 = vector.shape_cast %26 : vector<1x4x1xf32> to vector<4x1xf32>
      %28 = vector.shape_cast %25 : vector<4x1xf32> to vector<1x4x1xf32>
      tpu.vector_store %arg4[%c0_21, %c0_22, %c0_23], %28 {strides = array<i32>} : memref<1x4x1xf32, #tpu.memory_space<vmem>>, vector<1x4x1xf32>,
    } else {
    }
    %c0 = arith.constant 0 : index
    %c0_1 = arith.constant 0 : index
    %c0_2 = arith.constant 0 : index
    %3 = vector.load %arg2[%c0, %c0_1, %c0_2] : memref<1x4x128xf32, #tpu.memory_space<vmem>>, vector<1x4x128xf32>
    %4 = vector.shape_cast %3 : vector<1x4x128xf32> to vector<4x128xf32>
    %c0_3 = arith.constant 0 : index
    %c0_4 = arith.constant 0 : index
    %c0_5 = arith.constant 0 : index
    %5 = vector.load %arg3[%c0_3, %c0_4, %c0_5] : memref<1x4x4xf32, #tpu.memory_space<vmem>>, vector<1x4x4xf32>
    %6 = vector.shape_cast %5 : vector<1x4x4xf32> to vector<4x4xf32>
    %7 = tpu.transpose %4, [1, 0] : vector<4x128xf32> -> vector<128x4xf32>
    %cst = arith.constant dense<0.000000e+00> : vector<4x4xf32>
    %8 = tpu.matmul %4, %7, %cst {dimension_numbers = #tpu.dot_dimension_numbers<[1], [0], [0], [1], [0, 0, 1, 1], [], []>} : vector<4x128xf32>, vector<128x4xf32>, vector<4x4xf32> -> vector<4x4xf32>
    %9 = arith.addf %6, %8 : vector<4x4xf32>
    %c0_6 = arith.constant 0 : index
    %c0_7 = arith.constant 0 : index
    %c0_8 = arith.constant 0 : index
    %10 = vector.load %arg3[%c0_6, %c0_7, %c0_8] : memref<1x4x4xf32, #tpu.memory_space<vmem>>, vector<1x4x4xf32>
    %11 = vector.shape_cast %10 : vector<1x4x4xf32> to vector<4x4xf32>
    %12 = vector.shape_cast %9 : vector<4x4xf32> to vector<1x4x4xf32>
    tpu.vector_store %arg3[%c0_6, %c0_7, %c0_8], %12 {strides = array<i32>} : memref<1x4x4xf32, #tpu.memory_space<vmem>>, vector<1x4x4xf32>,
    %c0_9 = arith.constant 0 : index
    %c0_10 = arith.constant 0 : index
    %c0_11 = arith.constant 0 : index
    %13 = vector.load %arg4[%c0_9, %c0_10, %c0_11] : memref<1x4x1xf32, #tpu.memory_space<vmem>>, vector<1x4x1xf32>
    %14 = vector.shape_cast %13 : vector<1x4x1xf32> to vector<4x1xf32>
    %cst_12 = arith.constant dense<0.000000e+00> : vector<4xf32>
    %15 = vector.multi_reduction <add>, %4, %cst_12 [1] : vector<4x128xf32> to vector<4xf32>
    %16 = vector.shape_cast %15 : vector<4xf32> to vector<4x1xf32>
    %17 = arith.addf %14, %16 : vector<4x1xf32>
    %c0_13 = arith.constant 0 : index
    %c0_14 = arith.constant 0 : index
    %c0_15 = arith.constant 0 : index
    %18 = vector.load %arg4[%c0_13, %c0_14, %c0_15] : memref<1x4x1xf32, #tpu.memory_space<vmem>>, vector<1x4x1xf32>
    %19 = vector.shape_cast %18 : vector<1x4x1xf32> to vector<4x1xf32>
    %20 = vector.shape_cast %17 : vector<4x1xf32> to vector<1x4x1xf32>
    tpu.vector_store %arg4[%c0_13, %c0_14, %c0_15], %20 {strides = array<i32>} : memref<1x4x1xf32, #tpu.memory_space<vmem>>, vector<1x4x1xf32>,
    return
  }
  func.func @transform_0(%arg0: i32, %arg1: i32) -> (i32, i32, i32) {
    %c0_i32 = arith.constant 0 : i32
    %c0_i32_0 = arith.constant 0 : i32
    return %arg0, %c0_i32, %arg1 : i32, i32, i32
  }
  func.func @transform_1(%arg0: i32, %arg1: i32) -> (i32, i32, i32) {
    %c0_i32 = arith.constant 0 : i32
    %c0_i32_0 = arith.constant 0 : i32
    %c0_i32_1 = arith.constant 0 : i32
    return %arg0, %c0_i32, %c0_i32_0 : i32, i32, i32
  }
  func.func @transform_2(%arg0: i32, %arg1: i32) -> (i32, i32, i32) {
    %c0_i32 = arith.constant 0 : i32
    %c0_i32_0 = arith.constant 0 : i32
    %c0_i32_1 = arith.constant 0 : i32
    return %arg0, %c0_i32, %c0_i32_0 : i32, i32, i32
  }
}

</mosaic_0001>

<bundles_post_ra>
// kernel: tpu_custom_call.1
= control target key start
LH: loop header
LB: loop body
LE: loop exit
PB: predicated region body
PF: predicated region fallthrough
CT: control target
= control target key end

     0   :  { %8 = vsyncpa [#allocation3], 0  ;;  %s688_s0 = inlined_call_operand.hbm [shape: f32[2,4,128], index: 0, kind: input, shape index: {}]   ;;  %s689_s1 = inlined_call_operand.hbm [shape: f32[2,4,4], index: 1, kind: output, shape index: {0}]   ;;  %s690_s2 = inlined_call_operand.vmem [shape: f32[2,4,1], index: 2, kind: output, shape index: {1}]  }
   0x1   :  { %10 = vsyncpa [#allocation3 + $0x1], 0 }
   0x2   :  { %11 = vsyncpa [#allocation4], 0 }
   0x3   :  { %13 = vsyncpa [#allocation4 + $0x1], 0  ;;  %s561_s9 = smov 0   ;;  %s563_s10 = smov 0  }
   0x4   :  { %s565_s11 = smov 0   ;;  %s567_s12 = smov 0  }
   0x5   :  { %s569_s13 = smov 0   ;;  %s571_s14 = smov 0  }
   0x6 LB: > { %s354_s15 = sadd.s32 4294967295, %s543_s14   ;;  %s355_s16 = sadd.s32 4294967294, %s543_s14   ;;  %s543_s14 = sphi %s571_s14, %s19_s14   ;;  %s539_s13 = sphi %s569_s13, %s699_s13   ;;  %s535_s12 = sphi %s567_s12, %s698_s12   ;;  %s531_s11 = sphi %s565_s11, %s697_s11   ;;  %s527_s10 = sphi %s563_s10, %s696_s10   ;;  %s523_s9 = sphi %s561_s9, %s695_s9  }
   0x7   : > { %s31_s17 = sadd.s32 1, %s539_s13  ;;  %s40_s18 = sadd.s32 1, %s531_s11 }
   0x8   : > { %p33_p0 = scmp.ge.s32.totalorder %s31_s17, 2  ;;  %p47_p1 = scmp.ne.s32.totalorder %s531_s11, %s527_s10 }
   0x9   : > { %p48_p2 = scmp.eq.s32.totalorder %s543_s14, 0  ;;  %p53_p3 = scmp.ne.s32.totalorder %s527_s10, %s523_s9 }
   0xa   : > { %s701_s17 = smov (%p33_p0, %s31_s17), 0  ;;  %p54_p5 = scmp.eq.s32.totalorder %s354_s15, 0 }
   0xb   : > { %p602_p4 = por %p48_p2, %p47_p1  ;;  %s35_s20 = ssub.s32 %s539_s13, %s701_s17 }
   0xc   : > { %p77_p6 = scmp.eq.s32.totalorder %s354_s15, 1  ;;  %p38_p7 = scmp.eq.s32.totalorder %s35_s20, 0 }
   0xd   : > { %p608_p8 = por %p54_p5, %p53_p3  ;;  %p83_p10 = scmp.eq.s32.totalorder %s355_s16, 1 }
   0xe   : > { %p612_p9 = por %p77_p6, %p47_p1  ;;  %p357_p12 = scmp.ge.s32.totalorder %s543_s14, 2 }
   0xf   : > { %s617_s23 = scalar_select %p38_p7, %s531_s11, %s40_s18  }
  0x10   : > { %p619_p11 = por %p83_p10, %p53_p3  ;;  %p380_p13 = scmp.lt.s32.totalorder %s543_s14, 2 }
  0x11   : > { %s129_s25 = sand.u32 1, %s531_s11   ;;  %s359_s27 = sshll.u32 %s539_s13, 2 }
  0x12   : > { %s358_s26 = sshll.u32 %s129_s25, 2  ;;  %s138_s30 = scalar_lea.hbm %s688_s0, %s359_s27 }
  0x13   : > { %s133_s3 = scalar_lea.vmem [#allocation2], %s358_s26  ;;  %s140_s5 = sshll.u32 %s138_s30, 4  ;;  %s141_s5 = int_to_ptr.hbm [resolvable:$true] %s140_s5 }
  0x14   : > { %s142_s4 = sshll.u32 %s133_s3, 4  ;;  %p373_p0 = pnand %p380_p13, %p602_p4  ;;  %s143_s4 = int_to_ptr.vmem [resolvable:$true] %s142_s4 }
  0x15   : > { %p360_p1 = scmp.ge.s32.totalorder %s543_s14, 1  ;;  %p147_p2 = scmp.lt.s32.totalorder %s543_s14, 3 }
  0x16   : > { %s130_s6 = scalar_lea.sflag [#allocation3], %s129_s25 }
  0x17   : > { %375 = dma.hbm_to_vmem [thread:$0]  (!%p373_p0), %s141_s5, 64, %s143_s4, %s130_s6  }
  0x18   : > { %p148_p3 = pnand %p360_p1, %p147_p2 }
  0x19   : > { %s635_s7 = sand.u32 (!%p148_p3), 1, %s527_s10  }
  0x1a   : > { %151 = sbr.rel (%p148_p3) target bundleno = 168 (0xa8), region = 24  ;;  %s361_s8 = sshll.u32 (!%p148_p3), %s635_s7, 2 }
  0x1b   : > { %s154_s15 = scalar_lea.sflag (!%p148_p3), [#allocation3], %s635_s7  ;;  %s157_s16 = scalar_lea.vmem (!%p148_p3), [#allocation2], %s361_s8 }
  0x1f   : > { %514 = dma.done.wait (%p608_p8), %s154_s15, 64  }
  0x20   : > { %516 = vsyncadd (%p608_p8), %s154_s15, 4294967232  ;;  %vm191_vm0 = vcmask 27648   ;;  %s176_s18 = scalar_lea.vmem [#allocation5], %s361_s8  ;;  %v545_v0 = vmov 0.0   ;;  %vm221_vm1 = vcmask 1043456   ;;  %p183_p4 = scmp.lt.s32.totalorder %s535_s12, 1 }
  0x21   : > { %192 = vst.msk [vmem:[%s176_s18] sm:$0xf] %vm191_vm0, %v545_v0  ;;  %v195_v1 = vld [vmem:[%s157_s16] sm:$0xf]  ;;  %vm193_vm2 = vcmask 3072   ;;  %s365_s27 = sshll.u32 %s535_s12, 2 }
  0x22   : > { %212 = vmatpush.xpose.msra.mxu0 %v195_v1  ;;  %v222_v2 = vsel %vm221_vm1, %v195_v1, 0.0  ;;  %s184_s19 = scalar_select %p183_p4, %s535_s12, 1 }
  0x23   : > { %223 = vadd.xlane.f32.xlu0 %v222_v2  ;;  %s243_s30 = scalar_lea.hbm %s689_s1, %s365_s27  ;;  %s245_s3 = sshll.u32 %s176_s18, 4  ;;  %s246_s3 = int_to_ptr.vmem [resolvable:$true] %s245_s3 }
  0x24   : > { %s363_s20 = sshll.u32 %s184_s19, 2  ;;  %s247_s4 = sshll.u32 %s243_s30, 4  ;;  %s248_s4 = int_to_ptr.hbm [resolvable:$true] %s247_s4 }
  0x25   : > { %213 = vmatmul.f32.vlgmr.msra.gmra.mxu0 %v195_v1  ;;  %s186_s26 = scalar_lea.vmem %s690_s2, %s363_s20  ;;  %s229_s5 = scalar_lea.sflag [#allocation4], %s635_s7 }
  0x26   : > { %194 = vst.msk [vmem:[%s186_s26] sm:$0xf] %vm193_vm2, %v545_v0  ;;  %s475_s6 = sshra.s32 %s248_s4, 4  ;;  %s481_s16 = scalar_lea.hbm %s689_s1, 8  ;;  %s476_s6 = int_to_ptr.hbm [resolvable:$true] %s475_s6 }
  0x27   : > { %s477_s8 = scalar_lea.hbm %s476_s6, 4  ;;  %p482_p8 = scmp.lt.s32.totalorder %s476_s6, %s689_s1 }
  0x28   : > { %v196_v6 = vld [vmem:[%s176_s18] sm:$0xf]  ;;  %p478_p5 = scmp.ne.s32.totalorder %s476_s6, %s477_s8  ;;  %p483_p10 = scmp.lt.s32.totalorder %s481_s16, %s477_s8 }
  0x2a   : > { %p479_p6 = pnand %p478_p5, %p612_p9  ;;  %p484_p13 = por %p483_p10, %p482_p8 }
  0x2c   : > { %p480_p7 = pneg %p479_p6 }
  0x2d   : > { %v220_v3 = vld [vmem:[%s186_s26] sm:$0xf] }
  0x2e   : > { %p485_p0 = pnand %p484_p13, %p480_p7 }
  0x96   : > { %v224_v4 = vpop.xlane.xlu0 %223 }
  0x97   : > { %v225_v5 = vadd.f32 %v224_v4, %v220_v3 }
  0x99   : > { %227 = vst.msk [vmem:[%s186_s26] sm:$0xf] %vm193_vm2, %v225_v5 }
  0xa2   : > { %v214_v7 = vpop.f32.mrf.mxu0 }
  0xa3   : > { %v217_v8 = vadd.f32 %v214_v7, %v196_v6 }
  0xa5   : > { %219 = vst.msk [vmem:[%s176_s18] sm:$0xf] %vm191_vm0, %v217_v8 }
  0xa6   : > { %488 = shalt.err (!%p485_p0)
}
  0xa7   : > { %370 = dma.vmem_to_hbm [thread:$0]  (%p612_p9), %s246_s3, 64, %s248_s4, %s229_s5  }
  0xa8 PF: > { %s262_s7 = sand.u32 1, %s523_s9   ;;  %p377_p1 = pnand %p357_p12, %p619_p11 }
  0xa9   : > { %s263_s18 = scalar_lea.sflag [#allocation4], %s262_s7 }
  0xaa   : > { %p378_p2 = pneg %p377_p1 }
  0xac   : > { %518 = dma.done.wait (%p378_p2), %s263_s18, 64  }
  0xad   : > { %520 = vsyncadd (%p378_p2), %s263_s18, 4294967232  ;;  %s19_s14 = sadd.s32 1, %s543_s14   ;;  %s695_s9 = smov %s527_s10 }
  0xae   : > { %p16_p3 = scmp.ge.s32.totalorder %s19_s14, 4   ;;  %s696_s10 = smov %s531_s11 }
  0xaf   : > { %s697_s11 = smov %s617_s23  ;;  %s698_s12 = smov %s539_s13 }
  0xb0   : > { %s699_s13 = smov %s701_s17  ;;  %18 = sbr.rel (!%p16_p3) target bundleno = 6 (0x6), region = 85 }
  0xb5   :  { %276 = vsyncpa [#allocation3], 1 }
  0xb6   :  { %278 = vsyncpa [#allocation3 + $0x1], 1 }
  0xb7   :  { %279 = vsyncpa [#allocation4], 1 }
  0xb8   :  { %281 = vsyncpa [#allocation4 + $0x1], 1 }

</bundles_post_ra>
